<compile_context>
chip_gen: v6e
topology: v6e:2x2x1
jax: 0.10.0
libtpu: 0.0.40
codegen_flags: <defaults>
</compile_context>

<pallas_src>
import functools

import jax
import jax.numpy as jnp
from jax.experimental import pallas as pl
from jax.experimental.pallas import tpu as pltpu


# ----------------------------- kernels --------------------------------------


def _sigmoid(y):
    # Exact sigmoid.  (pl.reciprocal(approx=True) is only a win when the VPU is
    # the binding slot; here it cost accuracy in interpret mode for no speedup.)
    return 1.0 / (1.0 + jnp.exp(-y))


def _fc_sigmoid_kernel(x_t_ref, w_ref, b_ref, o_ref):
    # x_t_ref: (In, TB)  w_ref: (Out, In)  b_ref: (Out, 1)  o_ref: (Out, TB)
    # Native-dtype operands straight into the MXU; f32 accumulation.
    y = jnp.dot(w_ref[...], x_t_ref[...], preferred_element_type=jnp.float32)
    y = y + b_ref[...]
    o_ref[...] = _sigmoid(y).astype(o_ref.dtype)


def _fc_bn_sigmoid_kernel(x_t_ref, w_ref, gamma_ref, beta_ref, o_ref, *, eps):
    # x_t_ref: (In, B)  w_ref: (Out, In)  gamma/beta: (Out, 1)  o_ref: (Out, B)
    # No bias input: BatchNorm's mean subtraction cancels a per-feature constant.
    y = jnp.dot(w_ref[...], x_t_ref[...], preferred_element_type=jnp.float32)
    # BatchNorm1d, training-mode statistics (biased variance), batch axis = lanes.
    mean = jnp.mean(y, axis=-1, keepdims=True)                  # (Out, 1), XLU reduce
    centered = y - mean
    var = jnp.mean(centered * centered, axis=-1, keepdims=True)
    y = centered * jax.lax.rsqrt(var + eps) * gamma_ref[...] + beta_ref[...]
    o_ref[...] = _sigmoid(y).astype(o_ref.dtype)


# ----------------------------- wrapper ---------------------------------------


def _pick_batch_tile(B):
    # Lane-axis (batch) tile: multiple of 128 for unmasked stores; prefer >= 2
    # slabs so the "parallel" grid axis can shard across the two v7x TensorCores.
    for t in (1024, 512, 256, 128):
        if B % t == 0 and B // t >= 2:
            return t
    return B


def patient_layer_classification(x, weight, bias, gamma=None, beta=None,
                                 *, batch_norm=False, eps=1e-5):
    """FC -> optional BatchNorm1d (training-mode stats) -> Sigmoid.

    x: (B, in_size); weight: (out_size, in_size)  [PyTorch Linear layout];
    bias/gamma/beta: (out_size,).  Returns (B, out_size) in x.dtype.
    """
    B, in_size = x.shape
    out_size = weight.shape[0]

    # Batch on the lane axis -> lane-dense output stores.  (Layout plumbing.)
    x_t = x.T                                   # (in_size, B)
    out_dtype = x.dtype

    if batch_norm:
        gamma2 = gamma.reshape(out_size, 1).astype(jnp.float32)
        beta2 = beta.reshape(out_size, 1).astype(jnp.float32)
        # Full-batch statistics are required -> single full-array block.
        out_t = pl.pallas_call(
            functools.partial(_fc_bn_sigmoid_kernel, eps=eps),
            out_shape=jax.ShapeDtypeStruct((out_size, B), out_dtype),
            in_specs=[
                pl.BlockSpec((in_size, B), lambda: (0, 0)),
                pl.BlockSpec((out_size, in_size), lambda: (0, 0)),
                pl.BlockSpec((out_size, 1), lambda: (0, 0)),
                pl.BlockSpec((out_size, 1), lambda: (0, 0)),
            ],
            out_specs=pl.BlockSpec((out_size, B), lambda: (0, 0)),
        )(x_t, weight, gamma2, beta2)
    else:
        bias2 = bias.reshape(out_size, 1).astype(jnp.float32)
        tb = _pick_batch_tile(B)
        out_t = pl.pallas_call(
            _fc_sigmoid_kernel,
            out_shape=jax.ShapeDtypeStruct((out_size, B), out_dtype),
            grid_spec=pltpu.PrefetchScalarGridSpec(
                num_scalar_prefetch=0,
                grid=(B // tb,),
                in_specs=[
                    pl.BlockSpec((in_size, tb), lambda i: (0, i)),
                    pl.BlockSpec((out_size, in_size), lambda i: (0, 0)),
                    pl.BlockSpec((out_size, 1), lambda i: (0, 0)),
                ],
                out_specs=pl.BlockSpec((out_size, tb), lambda i: (0, i)),
            ),
            compiler_params=pltpu.CompilerParams(
                dimension_semantics=("parallel",)),
        )(x_t, weight, bias2)

    return out_t.T                              # (B, out_size)


# ----------------------------- demo / check ----------------------------------


def _init_params(key, in_size, out_size):
    """Deterministic init matching torch.nn.Linear's U(-1/sqrt(in), 1/sqrt(in))."""
    kw, kb, kg, kbeta = jax.random.split(key, 4)
    bound = 1.0 / jnp.sqrt(jnp.float32(in_size))
    weight = jax.random.uniform(kw, (out_size, in_size), jnp.float32, -bound, bound)
    bias = jax.random.uniform(kb, (out_size,), jnp.float32, -bound, bound)
    # PyTorch init is gamma=1, beta=0; use non-trivial values so the affine
    # path of the BN kernel is actually exercised by the check.
    gamma = jax.random.uniform(kg, (out_size,), jnp.float32, 0.5, 1.5)
    beta = jax.random.uniform(kbeta, (out_size,), jnp.float32, -0.5, 0.5)
    return weight, bias, gamma, beta


if __name__ == "__main__":
    key = jax.random.PRNGKey(0)
    k_x, k_p, k_pred = jax.random.split(key, 3)

    # Small shapes consistent with the module's patient head:
    # a batch of patient feature vectors -> hidden features -> scalar prediction.
    B, in_size, out_size = 256, 32, 16
    x = jax.random.normal(k_x, (B, in_size), jnp.float32)
    weight, bias, gamma, beta = _init_params(k_p, in_size, out_size)

    # batch_norm=False path (module default): gridded, parallel over batch tiles.
    out_plain = patient_layer_classification(x, weight, bias, batch_norm=False)
    # batch_norm=True path (training-mode batch statistics), bias folded away.
    out_bn = patient_layer_classification(x, weight, bias, gamma, beta,
                                          batch_norm=True)
    # The module's actual pred_layer shape: out_size = 1 (patient MI prediction).
    w1, b1, _, _ = _init_params(k_pred, out_size, 1)
    patient_pred = patient_layer_classification(out_plain, w1, b1,
                                                batch_norm=False)

    jax.block_until_ready(out_plain)
    jax.block_until_ready(out_bn)
    jax.block_until_ready(patient_pred)

    # Pure-JAX reference checks.  Tolerances cover default-precision (bf16-pass)
    # MXU rounding differences between the kernel's W @ x^T and the reference's
    # x @ W^T on real hardware; in interpret mode the match is ~float32-exact.
    ref_plain = 1.0 / (1.0 + jnp.exp(-(x @ weight.T + bias)))
    assert jnp.allclose(out_plain, ref_plain, atol=5e-3, rtol=0), "plain path mismatch"

    y = x @ weight.T + bias
    mu = y.mean(0, keepdims=True)
    var = ((y - mu) ** 2).mean(0, keepdims=True)
    ref_bn = 1.0 / (1.0 + jnp.exp(-((y - mu) / jnp.sqrt(var + 1e-5) * gamma + beta)))
    assert jnp.allclose(out_bn, ref_bn, atol=1e-2, rtol=0), "bn path mismatch"

    ref_pred = 1.0 / (1.0 + jnp.exp(-(out_plain @ w1.T + b1)))
    assert jnp.allclose(patient_pred, ref_pred, atol=5e-3, rtol=0), "pred layer mismatch"

    print("KERNEL_OK")
</pallas_src>

<mosaic_0001>
module attributes {stable_mosaic.version = 11 : i64} {
  func.func @_fc_sigmoid_kernel(%arg0: i32, %arg1: memref<32x128xf32, #tpu.memory_space<vmem>>, %arg2: memref<16x32xf32, #tpu.memory_space<vmem>>, %arg3: memref<16x1xf32, #tpu.memory_space<vmem>>, %arg4: memref<16x128xf32, #tpu.memory_space<vmem>>) attributes {dimension_semantics = [#tpu.dimension_semantics<parallel>], iteration_bounds = array<i64: 2>, scalar_prefetch = 0 : i64, scratch_operands = 0 : i64, tpu.core_type = #tpu.core_type<tc>, window_params = [{transform_indices = @transform_0, window_bounds = array<i64: 32, 128>}, {pipeline_mode = #tpu.pipeline_mode<synchronous>, transform_indices = @transform_1, window_bounds = array<i64: 16, 32>}, {pipeline_mode = #tpu.pipeline_mode<synchronous>, transform_indices = @transform_2, window_bounds = array<i64: 16, 1>}, {transform_indices = @transform_3, window_bounds = array<i64: 16, 128>}]} {
    %c0 = arith.constant 0 : index
    %c0_0 = arith.constant 0 : index
    %0 = vector.load %arg2[%c0, %c0_0] : memref<16x32xf32, #tpu.memory_space<vmem>>, vector<16x32xf32>
    %c0_1 = arith.constant 0 : index
    %c0_2 = arith.constant 0 : index
    %1 = vector.load %arg1[%c0_1, %c0_2] : memref<32x128xf32, #tpu.memory_space<vmem>>, vector<32x128xf32>
    %cst = arith.constant dense<0.000000e+00> : vector<16x128xf32>
    %2 = tpu.matmul %0, %1, %cst {dimension_numbers = #tpu.dot_dimension_numbers<[1], [0], [0], [1], [0, 0, 1, 1], [], []>} : vector<16x32xf32>, vector<32x128xf32>, vector<16x128xf32> -> vector<16x128xf32>
    %c0_3 = arith.constant 0 : index
    %c0_4 = arith.constant 0 : index
    %3 = vector.load %arg3[%c0_3, %c0_4] : memref<16x1xf32, #tpu.memory_space<vmem>>, vector<16x1xf32>
    %4 = vector.broadcast %3 : vector<16x1xf32> to vector<16x128xf32>
    %5 = arith.addf %2, %4 : vector<16x128xf32>
    %cst_5 = arith.constant 0.000000e+00 : f32
    %6 = vector.broadcast %cst_5 : f32 to vector<16x128xf32>
    %7 = arith.subf %6, %5 : vector<16x128xf32>
    %8 = math.exp %7 : vector<16x128xf32>
    %cst_6 = arith.constant 1.000000e+00 : f32
    %9 = vector.broadcast %cst_6 : f32 to vector<16x128xf32>
    %10 = arith.addf %9, %8 : vector<16x128xf32>
    %cst_7 = arith.constant 1.000000e+00 : f32
    %11 = vector.broadcast %cst_7 : f32 to vector<16x128xf32>
    %12 = arith.divf %11, %10 : vector<16x128xf32>
    %c0_8 = arith.constant 0 : index
    %c0_9 = arith.constant 0 : index
    %13 = vector.load %arg4[%c0_8, %c0_9] : memref<16x128xf32, #tpu.memory_space<vmem>>, vector<16x128xf32>
    tpu.vector_store %arg4[%c0_8, %c0_9], %12 {strides = array<i32>} : memref<16x128xf32, #tpu.memory_space<vmem>>, vector<16x128xf32>,
    return
  }
  func.func @transform_0(%arg0: i32) -> (i32, i32) {
    %c0_i32 = arith.constant 0 : i32
    %c0_i32_0 = arith.constant 0 : i32
    return %c0_i32, %arg0 : i32, i32
  }
  func.func @transform_1(%arg0: i32) -> (i32, i32) {
    %c0_i32 = arith.constant 0 : i32
    %c0_i32_0 = arith.constant 0 : i32
    %c0_i32_1 = arith.constant 0 : i32
    return %c0_i32, %c0_i32_0 : i32, i32
  }
  func.func @transform_2(%arg0: i32) -> (i32, i32) {
    %c0_i32 = arith.constant 0 : i32
    %c0_i32_0 = arith.constant 0 : i32
    %c0_i32_1 = arith.constant 0 : i32
    return %c0_i32, %c0_i32_0 : i32, i32
  }
  func.func @transform_3(%arg0: i32) -> (i32, i32) {
    %c0_i32 = arith.constant 0 : i32
    %c0_i32_0 = arith.constant 0 : i32
    return %c0_i32, %arg0 : i32, i32
  }
}

</mosaic_0001>

<bundles_post_ra>
// kernel: tpu_custom_call.1
= control target key start
LH: loop header
LB: loop body
LE: loop exit
PB: predicated region body
PF: predicated region fallthrough
CT: control target
= control target key end

     0   :  { %8 = vsyncpa [#allocation3], 0  ;;  %s775_s0 = inlined_call_operand.hbm [shape: f32[32,256], index: 0, kind: input, shape index: {}]   ;;  %s776_s1 = inlined_call_operand.vmem [shape: f32[16,32], index: 1, kind: input, shape index: {}]   ;;  %s777_s2 = inlined_call_operand.vmem [shape: f32[16,1], index: 2, kind: input, shape index: {}]   ;;  %s778_s3 = inlined_call_operand.hbm [shape: f32[16,256], index: 3, kind: output, shape index: {}]  }
   0x1   :  { %10 = vsyncpa [#allocation3 + $0x1], 0 }
   0x2   :  { %11 = vsyncpa [#allocation4], 0 }
   0x3   :  { %13 = vsyncpa [#allocation4 + $0x1], 0  ;;  %s604_s12 = smov 0   ;;  %s606_s13 = smov 0  }
   0x4   :  { %s608_s14 = smov 0   ;;  %s610_s15 = smov 0  }
   0x5 LB: > { %s625_s16 = sadd.s32 4294967295, %s573_s15   ;;  %s388_s17 = sadd.s32 4294967294, %s573_s15   ;;  %s573_s15 = sphi %s610_s15, %s794_s15   ;;  %s569_s14 = sphi %s608_s14, %s793_s14   ;;  %s565_s13 = sphi %s606_s13, %s792_s13   ;;  %s561_s12 = sphi %s604_s12, %s791_s12  }
   0x6   : > { %s629_s18 = sadd.s32 1, %s573_s15   ;;  %s26_s19 = sadd.s32 1, %s569_s14 }
   0x7   : > { %s23_s20 = ssub.s32 %s573_s15, %s629_s18  ;;  %p33_p0 = scmp.ne.s32.totalorder %s569_s14, %s565_s13 }
   0x8   : > { %p24_p1 = scmp.eq.s32.totalorder %s23_s20, 0  ;;  %p34_p2 = scmp.eq.s32.totalorder %s573_s15, 0 }
   0x9   : > { %p39_p3 = scmp.ne.s32.totalorder %s565_s13, %s561_s12  ;;  %p40_p4 = scmp.eq.s32.totalorder %s625_s16, 0 }
   0xa   : > { %s641_s21 = scalar_select %p24_p1, %s569_s14, %s26_s19  }
   0xb   : > { %p643_p5 = por %p34_p2, %p33_p0  ;;  %p647_p6 = por %p40_p4, %p39_p3 }
   0xc   : > { %p105_p7 = scmp.eq.s32.totalorder %s625_s16, 1  ;;  %p111_p8 = scmp.eq.s32.totalorder %s388_s17, 1 }
   0xd   : > { %s782_s23 = scalar_select %p647_p6, 1, 0 }
   0xe   : > { %p431_p10 = scmp.lt.s32.totalorder %s573_s15, 2  ;;  %p654_p11 = por %p105_p7, %p33_p0 }
   0xf   : > { %p658_p12 = por %p111_p8, %p39_p3  ;;  %s137_s26 = sand.u32 1, %s569_s14  }
  0x10   : > { %s783_s24 = scalar_select %p654_p11, 1, 0 }
  0x11   : > { %s784_s25 = scalar_select %p658_p12, 1, 0 }
  0x12   : > { %s392_s27 = sshll.u32 %s573_s15, 7  ;;  %s391_s28 = sshll.u32 %s137_s26, 5 }
  0x13   : > { %s667_s4 = scalar_lea.hbm %s775_s0, %s392_s27  ;;  %s141_s5 = scalar_lea.vmem [#allocation2], %s391_s28 }
  0x14   : > { %s147_s6 = sshll.u32 %s141_s5, 4  ;;  %p671_p13 = pnand %p431_p10, %p643_p5  ;;  %s675_s6 = int_to_ptr.vmem [resolvable:$true] %s147_s6 }
  0x15   : > { %s678_s8 = scalar_lea.sflag [#allocation3], %s137_s26  ;;  %s481_s9 = scalar_lea.hbm %s667_s4, 512 }
  0x16   : > { %p482_p1 = scmp.ne.s32.totalorder %s667_s4, %s481_s9  ;;  %p483_p2 = pneg %p671_p13 }
  0x17   : > { %s486_s17 = scalar_lea.hbm %s775_s0, 1024  ;;  %p487_p5 = scmp.lt.s32.totalorder %s667_s4, %s775_s0 }
  0x18   : > { %p484_p3 = pnand %p483_p2, %p482_p1  ;;  %p488_p7 = scmp.lt.s32.totalorder %s486_s17, %s481_s9 }
  0x1a   : > { %p485_p4 = pneg %p484_p3  ;;  %p489_p8 = por %p488_p7, %p487_p5 }
  0x1c   : > { %p490_p10 = pnand %p489_p8, %p485_p4 }
  0x1e   : > { %493 = shalt.err (!%p490_p10)
}
  0x1f   : > { %s494_s22 = scalar_lea.vmem %s675_s6, 512  ;;  %s575_s26 = smov [#allocation2]  }
  0x20   : > { %p495_p9 = scmp.ne.s32.totalorder %s675_s6, %s494_s22  ;;  %s499_s27 = sshll.u32 %s575_s26, 4  ;;  %s500_s27 = int_to_ptr.vmem [resolvable:$false] %s499_s27 }
  0x21   : > { %s501_s28 = scalar_lea.vmem %s500_s27, 1024  ;;  %p502_p3 = scmp.lt.s32.totalorder %s675_s6, %s500_s27 }
  0x22   : > { %p497_p0 = pnand %p495_p9, %p483_p2  ;;  %p503_p12 = scmp.lt.s32.totalorder %s501_s28, %s494_s22 }
  0x24   : > { %p498_p1 = pneg %p497_p0  ;;  %p504_p11 = por %p503_p12, %p502_p3 }
  0x26   : > { %p505_p6 = pnand %p504_p11, %p498_p1 }
  0x28   : > { %508 = shalt.err (!%p505_p6)
}
  0x29   : > { %s576_s29 = smov 256   ;;  %s577_s30 = smov 128  }
  0x2a   : > { %s578_s5 = smov 8   ;;  %p155_p9 = scmp.lt.s32.totalorder %s573_s15, 3 }
  0x2b   : > { %426 = dma.hbm_to_vmem [thread:$0]  (!%p671_p13), %s667_s4, 512, %s675_s6, %s678_s8, %s576_s29, %s577_s30, %s578_s5  }
  0x2c   : > { %p786_p0 = scmp.ge.s32.totalorder %s573_s15, 1 }
  0x2e   : > { %p156_p2 = pnand %p786_p0, %p155_p9 }
  0x2f   : > { %s703_s9 = sand.u32 (!%p156_p2), 1, %s565_s13   ;;  %p787_p6 = scmp.ne.s32.totalorder (!%p156_p2), %s782_s23, 0 }
  0x30   : > { %159 = sbr.rel (%p156_p2) target bundleno = 309 (0x135), region = 32  ;;  %s394_s10 = sshll.u32 (!%p156_p2), %s703_s9, 5 }
  0x31   : > { %s162_s11 = scalar_lea.sflag (!%p156_p2), [#allocation3], %s703_s9  ;;  %s165_s17 = scalar_lea.vmem (!%p156_p2), [#allocation2], %s394_s10 }
  0x35   : > { %552 = dma.done.wait (%p787_p6), %s162_s11, 512  }
  0x36   : > { %554 = vsyncadd (%p787_p6), %s162_s11, 4294966784  ;;  %v579_v0 = vmov 0   ;;  %vm206_vm0 = vcmask 261120   ;;  %v193_v1 = vld [vmem:[%s165_s17 + $0x18] sm:$0xff]  ;;  %v192_v2 = vld [vmem:[%s165_s17 + $0x10] sm:$0xff]  ;;  %s395_s26 = sshll.u32 %s703_s9, 4 }
  0x37   : > { %472 = vset.pattern.permute.xlu0 %v579_v0  ;;  %408 = vmatprep.subr.mxu0 %v193_v1  ;;  %v188_v3 = vld [vmem:[%s776_s1] sm:$0xff]  ;;  %v191_v4 = vld [vmem:[%s165_s17 + $0x8] sm:$0xff]  ;;  %s399_s27 = sshll.u32 %s625_s16, 7  ;;  %s187_s28 = scalar_lea.vmem [#allocation5], %s395_s26 }
  0x38   : > { %409 = vmatpush3.msra.mxu0 %v193_v1  ;;  %416 = vmatprep.mubr.msk.f32.mxu0 %vm206_vm0, %v188_v3  ;;  %v194_v5 = vld [vmem:[%s777_s2] sm:$0xff]  ;;  %v195_v7 = vld [vmem:[%s777_s2 + $0x8] sm:$0xff]  ;;  %s315_s29 = sshll.u32 %s187_s28, 4  ;;  %s730_s10 = scalar_lea.hbm %s778_s3, %s399_s27  ;;  %s732_s29 = int_to_ptr.vmem [resolvable:$true] %s315_s29 }
  0x39   : > { %410 = vmatprep.subr.mxu0 %v192_v2  ;;  %198 = vperm.xlu0 %472, %v194_v5   ;;  %v190_v6 = vld [vmem:[%s165_s17] sm:$0xff]  ;;  %v189_v8 = vld [vmem:[%s776_s1 + $0x8] sm:$0xff]  ;;  %s303_s11 = scalar_lea.sflag [#allocation4], %s703_s9  ;;  %s509_s17 = scalar_lea.vmem %s732_s29, 256 }
  0x3a   : > { %411 = vmatpush3.msra.mxu0 %v192_v2  ;;  %p510_p11 = scmp.ne.s32.totalorder %s732_s29, %s509_s17  ;;  %p788_p12 = scmp.ne.s32.totalorder %s783_s24, 0 }
  0x3b   : > { %412 = vmatprep.subr.mxu0 %v191_v4  ;;  %s580_s16 = smov [#allocation5]  }
  0x3c   : > { %413 = vmatpush3.msra.mxu0 %v191_v4  ;;  %p511_p13 = pnand %p510_p11, %p788_p12  ;;  %s513_s4 = sshll.u32 %s580_s16, 4  ;;  %s514_s4 = int_to_ptr.vmem [resolvable:$false] %s513_s4 }
  0x3d   : > { %414 = vmatprep.subr.mxu0 %v190_v6  ;;  %203 = vperm.xlu0 %472, %v195_v7   ;;  %s515_s6 = scalar_lea.vmem %s514_s4, 512  ;;  %p516_p5 = scmp.lt.s32.totalorder %s732_s29, %s514_s4 }
  0x3e   : > { %415 = vmatpush3.msra.mxu0 %v190_v6  ;;  %p512_p4 = pneg %p511_p13  ;;  %p517_p7 = scmp.lt.s32.totalorder %s515_s6, %s509_s17 }
  0x3f   : > { %417 = vmatmul.mubr.msk.f32.vlgmr.msra.gmra.mxu0 %vm206_vm0, %v189_v8 }
  0x40   : > { %p518_p8 = por %p517_p7, %p516_p5 }
  0x42   : > { %p519_p10 = pnand %p518_p8, %p512_p4 }
  0xb4   : > { %v199_v9 = vpop.permute.xlu0 %198 }
  0xb8   : > { %v204_v10 = vpop.permute.xlu0 %203 }
  0xff   : > { %v418_v11 = vpop.f32.mrf.mxu0 }
 0x100   : > { %v285_v12 = vadd.f32 %v418_v11, %v204_v10 }
 0x101   : > { %v279_v13 = vpop.f32.mrf.mxu0 }
 0x102   : > { %v289_v14 = vsub.f32 0.0, %v285_v12  ;;  %v280_v15 = vadd.f32 %v279_v13, %v199_v9 }
 0x104   : > { %v292_v16 = vmul.f32 1.442695, %v289_v14  ;;  %v288_v17 = vsub.f32 0.0, %v280_v15 }
 0x106   : > { %473 = vpow2.f32 %v292_v16  ;;  %v290_v18 = vmul.f32 1.442695, %v288_v17 }
 0x108   : > { %475 = vpow2.f32 %v290_v18 }
 0x113   : > { %v474_v19 = vpop.eup %473 }
 0x114   : > { %v295_v20 = vadd.f32 1.0, %v474_v19 }
 0x115   : > { %v476_v21 = vpop.eup %475 }
 0x116   : > { %477 = vrcp.f32 %v295_v20  ;;  %v294_v22 = vadd.f32 1.0, %v476_v21 }
 0x118   : > { %479 = vrcp.f32 %v294_v22 }
 0x123   : > { %v478_v23 = vpop.eup %477 }
 0x124   : > { %301 = vst [vmem:[%s187_s28 + $0x8] sm:$0xff] %v478_v23 }
 0x125   : > { %v480_v24 = vpop.eup %479 }
 0x126   : > { %300 = vst [vmem:[%s187_s28] sm:$0xff] %v480_v24 }
 0x127   : > { %522 = shalt.err (!%p519_p10)
}
 0x128   : > { %s523_s7 = scalar_lea.hbm %s730_s10, 256  ;;  %s527_s19 = scalar_lea.hbm %s778_s3, 512 }
 0x129   : > { %p524_p1 = scmp.ne.s32.totalorder %s730_s10, %s523_s7  ;;  %p528_p0 = scmp.lt.s32.totalorder %s730_s10, %s778_s3 }
 0x12a   : > { %p529_p2 = scmp.lt.s32.totalorder %s527_s19, %s523_s7 }
 0x12b   : > { %p525_p3 = pnand %p524_p1, %p788_p12 }
 0x12c   : > { %p530_p6 = por %p529_p2, %p528_p0 }
 0x12d   : > { %p526_p9 = pneg %p525_p3 }
 0x12f   : > { %p531_p11 = pnand %p530_p6, %p526_p9 }
 0x131   : > { %534 = shalt.err (!%p531_p11)
}
 0x132   : > { %s581_s26 = smov 128   ;;  %s582_s27 = smov 256  }
 0x133   : > { %s583_s28 = smov 8  }
 0x134   : > { %421 = dma.vmem_to_hbm [thread:$0]  (%p788_p12), %s732_s29, 256, %s730_s10, %s303_s11, %s581_s26, %s582_s27, %s583_s28  }
 0x135 PF: > { %s330_s30 = sand.u32 1, %s561_s12   ;;  %p789_p13 = scmp.ne.s32.totalorder %s784_s25, 0 }
 0x136   : > { %p790_p4 = scmp.ge.s32.totalorder %s573_s15, 2  ;;  %s331_s5 = scalar_lea.sflag [#allocation4], %s330_s30 }
 0x138   : > { %p428_p5 = pnand %p790_p4, %p789_p13 }
 0x13a   : > { %p429_p7 = pneg %p428_p5 }
 0x13c   : > { %556 = dma.done.wait (%p429_p7), %s331_s5, 256  }
 0x13d   : > { %558 = vsyncadd (%p429_p7), %s331_s5, 4294967040  ;;  %p16_p8 = scmp.ge.s32.totalorder %s629_s18, 4   ;;  %s791_s12 = smov %s565_s13 }
 0x13e   : > { %s792_s13 = smov %s569_s14  ;;  %s793_s14 = smov %s641_s21 }
 0x13f   : > { %s794_s15 = smov %s629_s18  ;;  %18 = sbr.rel (!%p16_p8) target bundleno = 5 (0x5), region = 77 }
 0x144   :  { %336 = vsyncpa [#allocation3], 1 }
 0x145   :  { %338 = vsyncpa [#allocation3 + $0x1], 1 }
 0x146   :  { %339 = vsyncpa [#allocation4], 1 }
 0x147   :  { %341 = vsyncpa [#allocation4 + $0x1], 1 }

</bundles_post_ra>
